<compile_context>
chip_gen: v7x
topology: tpu7x:2x2x1
jax: 0.10.0
libtpu: 0.0.40
codegen_flags: <defaults>
</compile_context>

<pallas_src>
import jax
import jax.numpy as jnp
from jax.experimental import pallas as pl
from jax.experimental.pallas import tpu as pltpu


# ---------------------------------------------------------------------------
# Pallas kernels
# ---------------------------------------------------------------------------

def _pool_kernel(x_ref, sum_ref):
    """Accumulate per-channel spatial sums over HW tiles.

    x_ref  : (1, C, t_hw)  current (batch, hw-tile) block
    sum_ref: (1, C, 1)     resident accumulator across the HW grid axis
    """
    @pl.when(pl.program_id(1) == 0)
    def _():
        sum_ref[...] = jnp.zeros_like(sum_ref)

    sum_ref[...] += jnp.sum(x_ref[...].astype(jnp.float32), axis=-1, keepdims=True)


def _gate_kernel(x_ref, s_ref, o_ref):
    """Elementwise channel gate: out = x * sigmoid(conv(mean(x))) (scale precomputed).

    x_ref: (1, C, t_hw)   s_ref: (1, C, 1)   o_ref: (1, C, t_hw)
    """
    o_ref[...] = (x_ref[...] * s_ref[...]).astype(o_ref.dtype)


# ---------------------------------------------------------------------------
# Helpers / wrapper
# ---------------------------------------------------------------------------

def _choose_hw_tile(HW, C, itemsize, tile_bytes_budget=2 << 20):
    """Largest lane-dense (multiple of 128) divisor of HW whose (C, t_hw) block
    stays within the per-tile byte budget.  Falls back to the full HW extent
    (full-array block dims are always legal) when HW is not 128-aligned."""
    if HW % 128 != 0:
        return HW
    cap = max(128, tile_bytes_budget // max(1, C * itemsize))
    cap = min(HW, (cap // 128) * 128)
    t = cap
    while t >= 128:
        if HW % t == 0:
            return t
        t -= 128
    return HW


def _conv1d_sigmoid(mean_bc, conv_w):
    """5-tap conv1d over channels (zero padding, no bias) + sigmoid on the pooled
    (B, C) vector.  O(B*C) work -> negligible plain-JAX glue."""
    k = conv_w.shape[0]
    pad = (k - 1) // 2
    C = mean_bc.shape[1]
    yp = jnp.pad(mean_bc, ((0, 0), (pad, pad)))
    out = jnp.zeros_like(mean_bc)
    for t in range(k):                      # static 5-iteration Python loop
        out = out + conv_w[t] * yp[:, t:t + C]
    return jax.nn.sigmoid(out)


def eca_forward(x, conv_w, hw_tile=None):
    """x: (B, C, H, W); conv_w: (k,) conv1d taps (PyTorch (1,1,k) squeezed)."""
    B, C, H, W = x.shape
    HW = H * W
    x_flat = x.reshape(B, C, HW)

    itemsize = jnp.dtype(x_flat.dtype).itemsize
    t_hw = hw_tile if hw_tile is not None else _choose_hw_tile(HW, C, itemsize)
    n_hw = HW // t_hw
    tile_bytes = C * t_hw * itemsize
    # Explicit scoped-VMEM request with headroom (double-buffered in + out tiles),
    # capped below v7x's 64 MiB physical VMEM.
    vmem_limit = int(min(max(16 << 20, 8 * tile_bytes), 48 << 20))

    # ---- Pass 1: per-(b, c) spatial sums (reduction over HW tiles) ------------
    sums = pl.pallas_call(
        _pool_kernel,
        out_shape=jax.ShapeDtypeStruct((B, C, 1), jnp.float32),
        grid_spec=pltpu.PrefetchScalarGridSpec(
            num_scalar_prefetch=0,
            grid=(B, n_hw),
            in_specs=[pl.BlockSpec((1, C, t_hw), lambda b, h: (b, 0, h))],
            out_specs=pl.BlockSpec((1, C, 1), lambda b, h: (b, 0, 0)),
        ),
        compiler_params=pltpu.CompilerParams(
            dimension_semantics=("parallel", "arbitrary"),
            vmem_limit_bytes=vmem_limit),
    )(x_flat)

    # ---- Tiny glue: mean -> 5-tap channel conv -> sigmoid (O(B*C)) ------------
    mean = sums[..., 0] * (1.0 / HW)                        # (B, C)
    scale = _conv1d_sigmoid(mean, conv_w.astype(jnp.float32))[..., None]  # (B, C, 1)

    # ---- Pass 2: lane-dense elementwise gate, both grid axes parallel ---------
    out = pl.pallas_call(
        _gate_kernel,
        out_shape=jax.ShapeDtypeStruct((B, C, HW), x.dtype),
        grid_spec=pltpu.PrefetchScalarGridSpec(
            num_scalar_prefetch=0,
            grid=(B, n_hw),
            in_specs=[pl.BlockSpec((1, C, t_hw), lambda b, h: (b, 0, h)),
                      pl.BlockSpec((1, C, 1), lambda b, h: (b, 0, 0))],
            out_specs=pl.BlockSpec((1, C, t_hw), lambda b, h: (b, 0, h)),
        ),
        compiler_params=pltpu.CompilerParams(
            dimension_semantics=("parallel", "parallel"),
            vmem_limit_bytes=vmem_limit),
    )(x_flat, scale)

    return out.reshape(B, C, H, W)


def eca_reference(x, conv_w):
    """Pure-JAX reference mirroring the PyTorch forward."""
    k = conv_w.shape[0]
    pad = (k - 1) // 2
    y = jnp.mean(x, axis=(2, 3))                     # (B, C)
    yp = jnp.pad(y, ((0, 0), (pad, pad)))            # zero-pad channels
    out = jnp.zeros_like(y)
    for t in range(k):
        out = out + conv_w[t] * yp[:, t:t + y.shape[1]]
    s = jax.nn.sigmoid(out)[:, :, None, None]
    return x * s


if __name__ == "__main__":
    key = jax.random.PRNGKey(0)
    kx, kw = jax.random.split(key)

    B, C, H, W = 2, 4, 16, 16
    k_size = 5

    x = jax.random.normal(kx, (B, C, H, W), dtype=jnp.float32)
    # deterministic conv1d weight (PyTorch shape (1,1,5), bias=False) -> (5,)
    conv_w = jax.random.normal(kw, (k_size,), dtype=jnp.float32) * 0.1

    eca = jax.jit(eca_forward)
    out = jax.block_until_ready(eca(x, conv_w))

    ref = eca_reference(x, conv_w)
    assert out.shape == (B, C, H, W)
    assert jnp.allclose(out, ref, atol=1e-5, rtol=1e-5)

    print("KERNEL_OK")
</pallas_src>

<mosaic_0001>
module attributes {stable_mosaic.version = 11 : i64} {
  func.func @_pool_kernel(%arg0: i32, %arg1: i32, %arg2: memref<1x4x256xf32, #tpu.memory_space<vmem>>, %arg3: memref<1x4x1xf32, #tpu.memory_space<vmem>>) attributes {dimension_semantics = [#tpu.dimension_semantics<parallel>, #tpu.dimension_semantics<arbitrary>], iteration_bounds = array<i64: 2, 1>, scalar_prefetch = 0 : i64, scratch_operands = 0 : i64, tpu.core_type = #tpu.core_type<tc>, window_params = [{transform_indices = @transform_0, window_bounds = array<i64: 1, 4, 256>}, {transform_indices = @transform_1, window_bounds = array<i64: 1, 4, 1>}]} {
    %c0_i32 = arith.constant 0 : i32
    %0 = arith.cmpi eq, %arg1, %c0_i32 : i32
    %1 = arith.extui %0 : i1 to i32
    %c0_i32_0 = arith.constant 0 : i32
    %2 = arith.cmpi ne, %1, %c0_i32_0 : i32
    scf.if %2 {
      %cst_9 = arith.constant 0.000000e+00 : f32
      %9 = vector.broadcast %cst_9 : f32 to vector<1x4x1xf32>
      %c0_10 = arith.constant 0 : index
      %c0_11 = arith.constant 0 : index
      %c0_12 = arith.constant 0 : index
      %10 = vector.load %arg3[%c0_10, %c0_11, %c0_12] : memref<1x4x1xf32, #tpu.memory_space<vmem>>, vector<1x4x1xf32>
      tpu.vector_store %arg3[%c0_10, %c0_11, %c0_12], %9 {strides = array<i32>} : memref<1x4x1xf32, #tpu.memory_space<vmem>>, vector<1x4x1xf32>,
    } else {
    }
    %c0 = arith.constant 0 : index
    %c0_1 = arith.constant 0 : index
    %c0_2 = arith.constant 0 : index
    %3 = vector.load %arg3[%c0, %c0_1, %c0_2] : memref<1x4x1xf32, #tpu.memory_space<vmem>>, vector<1x4x1xf32>
    %c0_3 = arith.constant 0 : index
    %c0_4 = arith.constant 0 : index
    %c0_5 = arith.constant 0 : index
    %4 = vector.load %arg2[%c0_3, %c0_4, %c0_5] : memref<1x4x256xf32, #tpu.memory_space<vmem>>, vector<1x4x256xf32>
    %cst = arith.constant dense<0.000000e+00> : vector<1x4xf32>
    %5 = vector.multi_reduction <add>, %4, %cst [2] : vector<1x4x256xf32> to vector<1x4xf32>
    %6 = vector.shape_cast %5 : vector<1x4xf32> to vector<1x4x1xf32>
    %7 = arith.addf %3, %6 : vector<1x4x1xf32>
    %c0_6 = arith.constant 0 : index
    %c0_7 = arith.constant 0 : index
    %c0_8 = arith.constant 0 : index
    %8 = vector.load %arg3[%c0_6, %c0_7, %c0_8] : memref<1x4x1xf32, #tpu.memory_space<vmem>>, vector<1x4x1xf32>
    tpu.vector_store %arg3[%c0_6, %c0_7, %c0_8], %7 {strides = array<i32>} : memref<1x4x1xf32, #tpu.memory_space<vmem>>, vector<1x4x1xf32>,
    return
  }
  func.func @transform_0(%arg0: i32, %arg1: i32) -> (i32, i32, i32) {
    %c0_i32 = arith.constant 0 : i32
    %c0_i32_0 = arith.constant 0 : i32
    return %arg0, %c0_i32, %arg1 : i32, i32, i32
  }
  func.func @transform_1(%arg0: i32, %arg1: i32) -> (i32, i32, i32) {
    %c0_i32 = arith.constant 0 : i32
    %c0_i32_0 = arith.constant 0 : i32
    %c0_i32_1 = arith.constant 0 : i32
    return %arg0, %c0_i32, %c0_i32_0 : i32, i32, i32
  }
}

module attributes {stable_mosaic.version = 11 : i64} {
  func.func @_gate_kernel(%arg0: i32, %arg1: i32, %arg2: memref<1x4x256xf32, #tpu.memory_space<vmem>>, %arg3: memref<1x4x1xf32, #tpu.memory_space<vmem>>, %arg4: memref<1x4x256xf32, #tpu.memory_space<vmem>>) attributes {dimension_semantics = [#tpu.dimension_semantics<parallel>, #tpu.dimension_semantics<parallel>], iteration_bounds = array<i64: 2, 1>, scalar_prefetch = 0 : i64, scratch_operands = 0 : i64, tpu.core_type = #tpu.core_type<tc>, window_params = [{transform_indices = @transform_0, window_bounds = array<i64: 1, 4, 256>}, {transform_indices = @transform_1, window_bounds = array<i64: 1, 4, 1>}, {transform_indices = @transform_2, window_bounds = array<i64: 1, 4, 256>}]} {
    %c0 = arith.constant 0 : index
    %c0_0 = arith.constant 0 : index
    %c0_1 = arith.constant 0 : index
    %0 = vector.load %arg2[%c0, %c0_0, %c0_1] : memref<1x4x256xf32, #tpu.memory_space<vmem>>, vector<1x4x256xf32>
    %c0_2 = arith.constant 0 : index
    %c0_3 = arith.constant 0 : index
    %c0_4 = arith.constant 0 : index
    %1 = vector.load %arg3[%c0_2, %c0_3, %c0_4] : memref<1x4x1xf32, #tpu.memory_space<vmem>>, vector<1x4x1xf32>
    %2 = vector.broadcast %1 : vector<1x4x1xf32> to vector<1x4x256xf32>
    %3 = arith.mulf %0, %2 : vector<1x4x256xf32>
    %c0_5 = arith.constant 0 : index
    %c0_6 = arith.constant 0 : index
    %c0_7 = arith.constant 0 : index
    %4 = vector.load %arg4[%c0_5, %c0_6, %c0_7] : memref<1x4x256xf32, #tpu.memory_space<vmem>>, vector<1x4x256xf32>
    tpu.vector_store %arg4[%c0_5, %c0_6, %c0_7], %3 {strides = array<i32>} : memref<1x4x256xf32, #tpu.memory_space<vmem>>, vector<1x4x256xf32>,
    return
  }
  func.func @transform_0(%arg0: i32, %arg1: i32) -> (i32, i32, i32) {
    %c0_i32 = arith.constant 0 : i32
    %c0_i32_0 = arith.constant 0 : i32
    return %arg0, %c0_i32, %arg1 : i32, i32, i32
  }
  func.func @transform_1(%arg0: i32, %arg1: i32) -> (i32, i32, i32) {
    %c0_i32 = arith.constant 0 : i32
    %c0_i32_0 = arith.constant 0 : i32
    %c0_i32_1 = arith.constant 0 : i32
    return %arg0, %c0_i32, %c0_i32_0 : i32, i32, i32
  }
  func.func @transform_2(%arg0: i32, %arg1: i32) -> (i32, i32, i32) {
    %c0_i32 = arith.constant 0 : i32
    %c0_i32_0 = arith.constant 0 : i32
    return %arg0, %c0_i32, %arg1 : i32, i32, i32
  }
}

</mosaic_0001>

<bundles_post_ra>
// kernel: eca_forward.2
= control target key start
LH: loop header
LB: loop body
LE: loop exit
PB: predicated region body
PF: predicated region fallthrough
CT: control target
= control target key end

     0   :  { %s302_s6 = smov 0   ;;  %s304_s7 = smov 0   ;;  %s334_s0 = inlined_call_operand.vmem [shape: f32[2,4,256], index: 0, kind: input, shape index: {}]   ;;  %s335_s1 = inlined_call_operand.vmem [shape: f32[2,4,1], index: 1, kind: output, shape index: {}]  }
   0x1   :  { %s306_s8 = smov 0  }
   0x2 LB: > { %s23_s9 = sadd.s32 1, %s285_s7  ;;  %p234_p0 = scmp.ge.s32.totalorder %s289_s8, 1  ;;  %s289_s8 = sphi %s306_s8, %s11_s8   ;;  %s285_s7 = sphi %s304_s7, %s337_s7   ;;  %s281_s6 = sphi %s302_s6, %s336_s6  }
   0x3   : > { %p25_p1 = scmp.ge.s32.totalorder %s23_s9, 2  ;;  %p106_p2 = scmp.lt.s32.totalorder %s289_s8, 3 }
   0x5   : > { %s339_s9 = smov (%p25_p1, %s23_s9), 0  ;;  %p107_p3 = pnand %p234_p0, %p106_p2 }
   0x6   : > { %p130_p4 = scmp.lt.s32.totalorder (!%p107_p3), %s281_s6, 1  ;;  %vm147_vm0 = vcmask (!%p107_p3), 3072   ;;  %vm154_vm1 = vcmask (!%p107_p3), 1043456   ;;  %v291_v1 = vmov (!%p107_p3), 0.0  }
   0x7   : > { %110 = sbr.rel (%p107_p3) target bundleno = 168 (0xa8), region = 24 }
   0xe   : > { %s341_s6 = smov (!%p130_p4, %s281_s6), 1 }
   0xf   : > { %s240_s10 = sshll.u32 %s341_s6, 3  ;;  %s237_s11 = sshll.u32 %s341_s6, 2 }
  0x10   : > { %s137_s14 = scalar_lea.vmem %s334_s0, %s240_s10  ;;  %s142_s17 = scalar_lea.vmem %s335_s1, %s237_s11 }
  0x11   : > { %v150_v0 = vld [vmem:[%s137_s14] sm:$0xff]  ;;  %148 = vst.msk [vmem:[%s142_s17] sm:$0xf] %vm147_vm0, %v291_v1 }
  0x12   : > { %v152_v2 = vcombine.high %v150_v0, %v150_v0  ;;  %v155_v3 = vsel %vm154_vm1, %v150_v0, 0.0 }
  0x14   : > { %v156_v4 = vsel %vm154_vm1, %v152_v2, 0.0 }
  0x15   : > { %v157_v5 = vadd.f32 %v156_v4, %v155_v3 }
  0x17   : > { %158 = vadd.xlane.f32.xlu0 %v157_v5 }
  0x18   : > { %v149_v6 = vld [vmem:[%s142_s17] sm:$0xf] }
  0xa4   : > { %v159_v7 = vpop.xlane.xlu0 %158 }
  0xa5   : > { %v160_v8 = vadd.f32 %v159_v7, %v149_v6 }
  0xa7   : > { %162 = vst.msk [vmem:[%s142_s17] sm:$0xf] %vm147_vm0, %v160_v8 }
  0xa8 PF: > { %s11_s8 = sadd.s32 1, %s289_s8   ;;  %s336_s6 = smov %s285_s7 }
  0xa9   : > { %p8_p5 = scmp.ge.s32.totalorder %s11_s8, 4   ;;  %s337_s7 = smov %s339_s9 }
  0xab   :  { %10 = sbr.rel (!%p8_p5) target bundleno = 2 (0x2), region = 58 }

// kernel: eca_forward.3
= control target key start
LH: loop header
LB: loop body
LE: loop exit
PB: predicated region body
PF: predicated region fallthrough
CT: control target
= control target key end

     0   :  { %s397_s9 = smov 0   ;;  %s399_s10 = smov 0   ;;  %s430_s0 = inlined_call_operand.vmem [shape: f32[2,4,256], index: 0, kind: input, shape index: {}]   ;;  %s431_s1 = inlined_call_operand.vmem [shape: f32[2,4,1], index: 1, kind: input, shape index: {}]   ;;  %s432_s2 = inlined_call_operand.vmem [shape: f32[2,4,256], index: 2, kind: output, shape index: {}]  }
   0x1   :  { %s401_s11 = smov 0  }
   0x2 LB: > { %s24_s12 = sadd.s32 1, %s374_s10  ;;  %p319_p0 = scmp.ge.s32.totalorder %s378_s11, 1  ;;  %s378_s11 = sphi %s401_s11, %s12_s11   ;;  %s374_s10 = sphi %s399_s10, %s434_s10   ;;  %s370_s9 = sphi %s397_s9, %s433_s9  }
   0x3   : > { %p26_p1 = scmp.ge.s32.totalorder %s24_s12, 2  ;;  %p142_p2 = scmp.lt.s32.totalorder %s378_s11, 3 }
   0x5   : > { %s436_s12 = smov (%p26_p1, %s24_s12), 0  ;;  %p143_p3 = pnand %p319_p0, %p142_p2 }
   0x6   : > { %p177_p4 = scmp.lt.s32.totalorder (!%p143_p3), %s370_s9, 1  ;;  %v380_v0 = vmov (!%p143_p3), 0   ;;  %v381_v2 = vmov (!%p143_p3), 839922192   ;;  %v209_v4 = vlaneseq (!%p143_p3) }
   0x7   : > { %146 = sbr.rel (%p143_p3) target bundleno = 151 (0x97), region = 28  ;;  %355 = vset.pattern.permute.xlu0 (!%p143_p3), %v380_v0  ;;  %v207_v3 = vunpack.c.l.s4 (!%p143_p3), %v381_v2 }
   0x8   : > { %v210_v6 = vshrl.u32 (!%p143_p3), %v209_v4, 7 }
   0x9   : > { %v208_v5 = vunpack.c.0.s8 (!%p143_p3), %v207_v3 }
   0xb   : > { %v211_v7 = vsub.s32 (!%p143_p3), %v208_v5, %v210_v6 }
   0xe   : > { %s438_s9 = smov (!%p177_p4, %s370_s9), 1 }
   0xf   : > { %s322_s13 = sshll.u32 %s438_s9, 2  ;;  %s327_s17 = sshll.u32 %s438_s9, 3 }
  0x10   : > { %s189_s16 = scalar_lea.vmem %s431_s1, %s322_s13  ;;  %s184_s20 = scalar_lea.vmem %s430_s0, %s327_s17 }
  0x11   : > { %v201_v1 = vld [vmem:[%s189_s16] sm:$0xf]  ;;  %s198_s23 = scalar_lea.vmem %s432_s2, %s327_s17 }
  0x12   : > { %204 = vperm.xlu0 %355, %v201_v1   ;;  %v200_v9 = vld [vmem:[%s184_s20] sm:$0xff] }
  0x91   : > { %v205_v8 = vpop.permute.xlu0 %204 }
  0x92   : > { %v212_v10 = vrot.slane %v205_v8, %v211_v7 }
  0x94   : > { %v214_v11 = vmul.f32 %v212_v10, %v200_v9 }
  0x96   : > { %215 = vst [vmem:[%s198_s23] sm:$0xff] %v214_v11 }
  0x97 PF: > { %s12_s11 = sadd.s32 1, %s378_s11   ;;  %s433_s9 = smov %s374_s10 }
  0x98   : > { %p9_p5 = scmp.ge.s32.totalorder %s12_s11, 4   ;;  %s434_s10 = smov %s436_s12 }
  0x9a   :  { %11 = sbr.rel (!%p9_p5) target bundleno = 2 (0x2), region = 61 }

</bundles_post_ra>
